<compile_context>
chip_gen: v7x
topology: tpu7x:2x2x1
jax: 0.10.0
libtpu: 0.0.40
codegen_flags: <defaults>
</compile_context>

<pallas_src>
import functools

import jax
import jax.numpy as jnp
from jax.experimental import pallas as pl
from jax.experimental.pallas import tpu as pltpu

_VMEM_LIMIT = 48 * 1024 * 1024   # explicit scoped-VMEM budget (< v7x 64 MiB physical)


def _layernorm(x, gamma_row, beta_row, eps=1e-5):
    # x: (S, D) f32; gamma_row/beta_row: (1, D) f32 — statistics kept in f32.
    mu = jnp.mean(x, axis=-1, keepdims=True)
    var = jnp.mean((x - mu) ** 2, axis=-1, keepdims=True)
    return (x - mu) * jax.lax.rsqrt(var + eps) * gamma_row + beta_row


def backbone_kernel(x_ref, wqkv_ref, wo_ref, w1_ref, w2_ref,
                    ln1_ref, ln2_ref, lnf_ref, xf_ref, *, num_heads):
    x = x_ref[0]                       # (S, D) f32
    S, D = x.shape
    H = num_heads
    Dh = D // H
    scale = 1.0 / (Dh ** 0.5)

    ln1 = ln1_ref[...]                 # (2, D): [gamma; beta]
    ln2 = ln2_ref[...]
    lnf = lnf_ref[...]

    # ---------------- causal self-attention (pre-LN) ----------------
    h = _layernorm(x, ln1[0:1, :], ln1[1:2, :])
    qkv = jnp.dot(h.astype(jnp.bfloat16), wqkv_ref[...],
                  preferred_element_type=jnp.float32)        # (S, 3D) f32
    q = qkv[:, 0 * D:1 * D] * scale    # fold 1/sqrt(Dh) into q (S*Dh mults, not S*S)
    k = qkv[:, 1 * D:2 * D]
    v = qkv[:, 2 * D:3 * D]

    # Head-major batch (H, S, Dh): both attention matmuls become a single
    # batched MXU contraction (batch dim 0) instead of H tiny ones.
    q3 = jnp.stack([q[:, i * Dh:(i + 1) * Dh] for i in range(H)],
                   axis=0).astype(jnp.bfloat16)
    k3 = jnp.stack([k[:, i * Dh:(i + 1) * Dh] for i in range(H)],
                   axis=0).astype(jnp.bfloat16)
    v3 = jnp.stack([v[:, i * Dh:(i + 1) * Dh] for i in range(H)],
                   axis=0).astype(jnp.bfloat16)

    s = jnp.einsum('hqd,hkd->hqk', q3, k3,
                   preferred_element_type=jnp.float32)       # (H, S, S) f32
    row = jax.lax.broadcasted_iota(jnp.int32, (S, S), 0)
    col = jax.lax.broadcasted_iota(jnp.int32, (S, S), 1)
    causal = (col <= row)[None, :, :]                        # (1, S, S)
    s = jnp.where(causal, s, jnp.float32(-1e30))
    s = s - jnp.max(s, axis=-1, keepdims=True)
    p = jnp.exp(s)                                           # f32 softmax math
    p = p * pl.reciprocal(jnp.sum(p, axis=-1, keepdims=True), approx=True)
    o3 = jnp.einsum('hqk,hkd->hqd', p.astype(jnp.bfloat16), v3,
                    preferred_element_type=jnp.float32)      # (H, S, Dh) f32
    attn = jnp.concatenate([o3[i] for i in range(H)], axis=-1)   # (S, D)

    x = x + jnp.dot(attn.astype(jnp.bfloat16), wo_ref[...],
                    preferred_element_type=jnp.float32)

    # ---------------- MLP ----------------
    h = _layernorm(x, ln2[0:1, :], ln2[1:2, :])
    h = jnp.dot(h.astype(jnp.bfloat16), w1_ref[...],
                preferred_element_type=jnp.float32)          # (S, Dff)
    h = jax.nn.gelu(h, approximate=True)
    x = x + jnp.dot(h.astype(jnp.bfloat16), w2_ref[...],
                    preferred_element_type=jnp.float32)

    # ---------------- final layernorm; bf16 out for the vocab head ----------------
    xf = _layernorm(x, lnf[0:1, :], lnf[1:2, :])
    xf_ref[0] = xf.astype(xf_ref.dtype)


def head_kernel(xf_ref, emb_ref, out_ref):
    # logits tile = xf @ E_tile^T, contraction expressed directly over the D
    # axis of both operands (no in-kernel transpose / relayout of E).
    out_ref[0] = jax.lax.dot_general(
        xf_ref[0], emb_ref[...],
        dimension_numbers=(((1,), (1,)), ((), ())),
        preferred_element_type=jnp.float32)


def _pick_vocab_tile(V):
    for tv in (1024, 512, 256, 128):
        if V % tv == 0:
            return tv
    return V        # toy / odd vocab sizes: single full-extent block


def lm_task_forward(params, input_ids, *, num_heads):
    emb = params['emb']                              # (V, D) f32 (tied table)
    # Embedding lookup (gather) is plain-JAX glue outside the kernels.
    x = emb[input_ids].astype(jnp.float32)           # (B, S, D)
    B, S, D = x.shape
    V = emb.shape[0]
    Dff = params['w1'].shape[1]

    bf16 = jnp.bfloat16
    wqkv = params['wqkv'].astype(bf16)
    wo = params['wo'].astype(bf16)
    w1 = params['w1'].astype(bf16)
    w2 = params['w2'].astype(bf16)
    emb_b = emb.astype(bf16)                         # head weight (tied)

    def full_spec(shape):
        n = len(shape)
        return pl.BlockSpec(shape, lambda b, _n=n: (0,) * _n)

    kernel = functools.partial(backbone_kernel, num_heads=num_heads)

    # ---- kernel 1: backbone, gridded over batch ----
    xf = pl.pallas_call(
        kernel,
        out_shape=jax.ShapeDtypeStruct((B, S, D), bf16),
        grid=(B,),
        in_specs=[
            pl.BlockSpec((1, S, D), lambda b: (b, 0, 0)),   # activations per batch
            full_spec((D, 3 * D)),                          # Wqkv (bf16)
            full_spec((D, D)),                              # Wo
            full_spec((D, Dff)),                            # W1
            full_spec((Dff, D)),                            # W2
            full_spec((2, D)),                              # ln1 gamma/beta (f32)
            full_spec((2, D)),                              # ln2 gamma/beta
            full_spec((2, D)),                              # ln_f gamma/beta
        ],
        out_specs=pl.BlockSpec((1, S, D), lambda b: (b, 0, 0)),
        compiler_params=pltpu.CompilerParams(
            dimension_semantics=("parallel",),
            vmem_limit_bytes=_VMEM_LIMIT),
    )(x, wqkv, wo, w1, w2, params['ln1'], params['ln2'], params['lnf'])

    # ---- kernel 2: tied vocab head, tiled over (batch, vocab tiles) ----
    TV = _pick_vocab_tile(V)
    logits = pl.pallas_call(
        head_kernel,
        out_shape=jax.ShapeDtypeStruct((B, S, V), jnp.float32),
        grid=(B, V // TV),
        in_specs=[
            pl.BlockSpec((1, S, D), lambda b, vi: (b, 0, 0)),   # xf (resident per b)
            pl.BlockSpec((TV, D), lambda b, vi: (vi, 0)),       # streamed E tile
        ],
        out_specs=pl.BlockSpec((1, S, TV), lambda b, vi: (b, 0, vi)),
        compiler_params=pltpu.CompilerParams(
            dimension_semantics=("parallel", "parallel"),
            vmem_limit_bytes=_VMEM_LIMIT),
    )(xf, emb_b)
    return logits


if __name__ == "__main__":
    # Small, deterministic synthetic config.
    B, S, D, V, H, Dff = 2, 8, 32, 64, 4, 64

    key = jax.random.PRNGKey(0)
    ks = jax.random.split(key, 6)

    def init(k, shape, scale=0.02):
        return (scale * jax.random.normal(k, shape)).astype(jnp.float32)

    params = {
        'emb':  init(ks[0], (V, D)),          # vocab_embedding.weight (tied with head)
        'wqkv': init(ks[1], (D, 3 * D)),
        'wo':   init(ks[2], (D, D)),
        'w1':   init(ks[3], (D, Dff)),
        'w2':   init(ks[4], (Dff, D)),
        'ln1':  jnp.stack([jnp.ones((D,), jnp.float32), jnp.zeros((D,), jnp.float32)]),
        'ln2':  jnp.stack([jnp.ones((D,), jnp.float32), jnp.zeros((D,), jnp.float32)]),
        'lnf':  jnp.stack([jnp.ones((D,), jnp.float32), jnp.zeros((D,), jnp.float32)]),
    }

    input_ids = jax.random.randint(ks[5], (B, S), 0, V, dtype=jnp.int32)

    # TODO(synk): `cache`/`seq_start` incremental-decoding path (LMTask.step) not
    # implemented; only the full-sequence forward is reproduced.
    logits = lm_task_forward(params, input_ids, num_heads=H)
    jax.block_until_ready(logits)
    assert logits.shape == (B, S, V) and logits.dtype == jnp.float32
    print("KERNEL_OK")
</pallas_src>

<mosaic_0001>
module attributes {stable_mosaic.version = 11 : i64} {
  func.func @backbone_kernel(%arg0: i32, %arg1: memref<1x8x32xf32, #tpu.memory_space<vmem>>, %arg2: memref<32x96xbf16, #tpu.memory_space<vmem>>, %arg3: memref<32x32xbf16, #tpu.memory_space<vmem>>, %arg4: memref<32x64xbf16, #tpu.memory_space<vmem>>, %arg5: memref<64x32xbf16, #tpu.memory_space<vmem>>, %arg6: memref<2x32xf32, #tpu.memory_space<vmem>>, %arg7: memref<2x32xf32, #tpu.memory_space<vmem>>, %arg8: memref<2x32xf32, #tpu.memory_space<vmem>>, %arg9: memref<1x8x32xbf16, #tpu.memory_space<vmem>>) attributes {dimension_semantics = [#tpu.dimension_semantics<parallel>], iteration_bounds = array<i64: 2>, scalar_prefetch = 0 : i64, scratch_operands = 0 : i64, tpu.core_type = #tpu.core_type<tc>, window_params = [{transform_indices = @transform_0, window_bounds = array<i64: 1, 8, 32>}, {pipeline_mode = #tpu.pipeline_mode<synchronous>, transform_indices = @transform_1, window_bounds = array<i64: 32, 96>}, {pipeline_mode = #tpu.pipeline_mode<synchronous>, transform_indices = @transform_2, window_bounds = array<i64: 32, 32>}, {pipeline_mode = #tpu.pipeline_mode<synchronous>, transform_indices = @transform_3, window_bounds = array<i64: 32, 64>}, {pipeline_mode = #tpu.pipeline_mode<synchronous>, transform_indices = @transform_4, window_bounds = array<i64: 64, 32>}, {pipeline_mode = #tpu.pipeline_mode<synchronous>, transform_indices = @transform_5, window_bounds = array<i64: 2, 32>}, {pipeline_mode = #tpu.pipeline_mode<synchronous>, transform_indices = @transform_6, window_bounds = array<i64: 2, 32>}, {pipeline_mode = #tpu.pipeline_mode<synchronous>, transform_indices = @transform_7, window_bounds = array<i64: 2, 32>}, {transform_indices = @transform_8, window_bounds = array<i64: 1, 8, 32>}]} {
    %c0 = arith.constant 0 : index
    %c0_0 = arith.constant 0 : index
    %c0_1 = arith.constant 0 : index
    %0 = vector.load %arg1[%c0, %c0_0, %c0_1] : memref<1x8x32xf32, #tpu.memory_space<vmem>>, vector<1x8x32xf32>
    %1 = vector.shape_cast %0 : vector<1x8x32xf32> to vector<8x32xf32>
    %c0_2 = arith.constant 0 : index
    %c0_3 = arith.constant 0 : index
    %2 = vector.load %arg6[%c0_2, %c0_3] : memref<2x32xf32, #tpu.memory_space<vmem>>, vector<2x32xf32>
    %c0_4 = arith.constant 0 : index
    %c0_5 = arith.constant 0 : index
    %3 = vector.load %arg7[%c0_4, %c0_5] : memref<2x32xf32, #tpu.memory_space<vmem>>, vector<2x32xf32>
    %c0_6 = arith.constant 0 : index
    %c0_7 = arith.constant 0 : index
    %4 = vector.load %arg8[%c0_6, %c0_7] : memref<2x32xf32, #tpu.memory_space<vmem>>, vector<2x32xf32>
    %5 = vector.extract_strided_slice %2 {offsets = [0, 0], sizes = [1, 32], strides = [1, 1]} : vector<2x32xf32> to vector<1x32xf32>
    %6 = vector.extract_strided_slice %2 {offsets = [1, 0], sizes = [1, 32], strides = [1, 1]} : vector<2x32xf32> to vector<1x32xf32>
    %cst = arith.constant dense<0.000000e+00> : vector<8xf32>
    %7 = vector.multi_reduction <add>, %1, %cst [1] : vector<8x32xf32> to vector<8xf32>
    %8 = vector.shape_cast %7 : vector<8xf32> to vector<8x1xf32>
    %cst_8 = arith.constant 3.200000e+01 : f32
    %9 = vector.broadcast %cst_8 : f32 to vector<8x1xf32>
    %10 = arith.divf %8, %9 : vector<8x1xf32>
    %11 = vector.broadcast %10 : vector<8x1xf32> to vector<8x32xf32>
    %12 = arith.subf %1, %11 : vector<8x32xf32>
    %13 = arith.mulf %12, %12 : vector<8x32xf32>
    %cst_9 = arith.constant dense<0.000000e+00> : vector<8xf32>
    %14 = vector.multi_reduction <add>, %13, %cst_9 [1] : vector<8x32xf32> to vector<8xf32>
    %15 = vector.shape_cast %14 : vector<8xf32> to vector<8x1xf32>
    %cst_10 = arith.constant 3.200000e+01 : f32
    %16 = vector.broadcast %cst_10 : f32 to vector<8x1xf32>
    %17 = arith.divf %15, %16 : vector<8x1xf32>
    %18 = vector.broadcast %10 : vector<8x1xf32> to vector<8x32xf32>
    %19 = arith.subf %1, %18 : vector<8x32xf32>
    %cst_11 = arith.constant 9.99999974E-6 : f32
    %20 = vector.broadcast %cst_11 : f32 to vector<8x1xf32>
    %21 = arith.addf %17, %20 : vector<8x1xf32>
    %22 = math.rsqrt %21 : vector<8x1xf32>
    %23 = vector.broadcast %22 : vector<8x1xf32> to vector<8x32xf32>
    %24 = arith.mulf %19, %23 : vector<8x32xf32>
    %25 = vector.broadcast %5 : vector<1x32xf32> to vector<8x32xf32>
    %26 = arith.mulf %24, %25 : vector<8x32xf32>
    %27 = vector.broadcast %6 : vector<1x32xf32> to vector<8x32xf32>
    %28 = arith.addf %26, %27 : vector<8x32xf32>
    %29 = arith.truncf %28 : vector<8x32xf32> to vector<8x32xbf16>
    %c0_12 = arith.constant 0 : index
    %c0_13 = arith.constant 0 : index
    %30 = vector.load %arg2[%c0_12, %c0_13] : memref<32x96xbf16, #tpu.memory_space<vmem>>, vector<32x96xbf16>
    %cst_14 = arith.constant dense<0.000000e+00> : vector<8x96xf32>
    %31 = tpu.matmul %29, %30, %cst_14 {dimension_numbers = #tpu.dot_dimension_numbers<[1], [0], [0], [1], [0, 0, 1, 1], [], []>} : vector<8x32xbf16>, vector<32x96xbf16>, vector<8x96xf32> -> vector<8x96xf32>
    %32 = vector.extract_strided_slice %31 {offsets = [0, 0], sizes = [8, 32], strides = [1, 1]} : vector<8x96xf32> to vector<8x32xf32>
    %cst_15 = arith.constant 0.353553385 : f32
    %33 = vector.broadcast %cst_15 : f32 to vector<8x32xf32>
    %34 = arith.mulf %32, %33 : vector<8x32xf32>
    %35 = vector.extract_strided_slice %31 {offsets = [0, 32], sizes = [8, 32], strides = [1, 1]} : vector<8x96xf32> to vector<8x32xf32>
    %36 = vector.extract_strided_slice %31 {offsets = [0, 64], sizes = [8, 32], strides = [1, 1]} : vector<8x96xf32> to vector<8x32xf32>
    %37 = vector.extract_strided_slice %34 {offsets = [0, 0], sizes = [8, 8], strides = [1, 1]} : vector<8x32xf32> to vector<8x8xf32>
    %38 = vector.extract_strided_slice %34 {offsets = [0, 8], sizes = [8, 8], strides = [1, 1]} : vector<8x32xf32> to vector<8x8xf32>
    %39 = vector.extract_strided_slice %34 {offsets = [0, 16], sizes = [8, 8], strides = [1, 1]} : vector<8x32xf32> to vector<8x8xf32>
    %40 = vector.extract_strided_slice %34 {offsets = [0, 24], sizes = [8, 8], strides = [1, 1]} : vector<8x32xf32> to vector<8x8xf32>
    %41 = vector.shape_cast %37 : vector<8x8xf32> to vector<1x8x8xf32>
    %42 = vector.shape_cast %38 : vector<8x8xf32> to vector<1x8x8xf32>
    %43 = vector.shape_cast %39 : vector<8x8xf32> to vector<1x8x8xf32>
    %44 = vector.shape_cast %40 : vector<8x8xf32> to vector<1x8x8xf32>
    %45 = tpu.concatenate %41, %42, %43, %44 in 0 : vector<1x8x8xf32>, vector<1x8x8xf32>, vector<1x8x8xf32>, vector<1x8x8xf32> -> vector<4x8x8xf32>
    %46 = arith.truncf %45 : vector<4x8x8xf32> to vector<4x8x8xbf16>
    %47 = vector.extract_strided_slice %35 {offsets = [0, 0], sizes = [8, 8], strides = [1, 1]} : vector<8x32xf32> to vector<8x8xf32>
    %48 = vector.extract_strided_slice %35 {offsets = [0, 8], sizes = [8, 8], strides = [1, 1]} : vector<8x32xf32> to vector<8x8xf32>
    %49 = vector.extract_strided_slice %35 {offsets = [0, 16], sizes = [8, 8], strides = [1, 1]} : vector<8x32xf32> to vector<8x8xf32>
    %50 = vector.extract_strided_slice %35 {offsets = [0, 24], sizes = [8, 8], strides = [1, 1]} : vector<8x32xf32> to vector<8x8xf32>
    %51 = vector.shape_cast %47 : vector<8x8xf32> to vector<1x8x8xf32>
    %52 = vector.shape_cast %48 : vector<8x8xf32> to vector<1x8x8xf32>
    %53 = vector.shape_cast %49 : vector<8x8xf32> to vector<1x8x8xf32>
    %54 = vector.shape_cast %50 : vector<8x8xf32> to vector<1x8x8xf32>
    %55 = tpu.concatenate %51, %52, %53, %54 in 0 : vector<1x8x8xf32>, vector<1x8x8xf32>, vector<1x8x8xf32>, vector<1x8x8xf32> -> vector<4x8x8xf32>
    %56 = arith.truncf %55 : vector<4x8x8xf32> to vector<4x8x8xbf16>
    %57 = vector.extract_strided_slice %36 {offsets = [0, 0], sizes = [8, 8], strides = [1, 1]} : vector<8x32xf32> to vector<8x8xf32>
    %58 = vector.extract_strided_slice %36 {offsets = [0, 8], sizes = [8, 8], strides = [1, 1]} : vector<8x32xf32> to vector<8x8xf32>
    %59 = vector.extract_strided_slice %36 {offsets = [0, 16], sizes = [8, 8], strides = [1, 1]} : vector<8x32xf32> to vector<8x8xf32>
    %60 = vector.extract_strided_slice %36 {offsets = [0, 24], sizes = [8, 8], strides = [1, 1]} : vector<8x32xf32> to vector<8x8xf32>
    %61 = vector.shape_cast %57 : vector<8x8xf32> to vector<1x8x8xf32>
    %62 = vector.shape_cast %58 : vector<8x8xf32> to vector<1x8x8xf32>
    %63 = vector.shape_cast %59 : vector<8x8xf32> to vector<1x8x8xf32>
    %64 = vector.shape_cast %60 : vector<8x8xf32> to vector<1x8x8xf32>
    %65 = tpu.concatenate %61, %62, %63, %64 in 0 : vector<1x8x8xf32>, vector<1x8x8xf32>, vector<1x8x8xf32>, vector<1x8x8xf32> -> vector<4x8x8xf32>
    %66 = arith.truncf %65 : vector<4x8x8xf32> to vector<4x8x8xbf16>
    "tpu.trace_start"() <{level = 10 : i32, message = "hqd,hkd->hqk"}> : () -> ()
    %cst_16 = arith.constant dense<0.000000e+00> : vector<4x8x8xf32>
    %67 = tpu.matmul %46, %56, %cst_16 {dimension_numbers = #tpu.dot_dimension_numbers<[2], [2], [1], [1], [0, 0, 0, 1, 1, 1], [0], [0]>} : vector<4x8x8xbf16>, vector<4x8x8xbf16>, vector<4x8x8xf32> -> vector<4x8x8xf32>
    "tpu.trace_stop"() : () -> ()
    %68 = tpu.iota {dimensions = array<i32: 0>} : vector<8x8xi32>
    %69 = tpu.iota {dimensions = array<i32: 1>} : vector<8x8xi32>
    %70 = arith.cmpi sle, %69, %68 : vector<8x8xi32>
    %71 = vector.shape_cast %70 : vector<8x8xi1> to vector<1x8x8xi1>
    %cst_17 = arith.constant -1.000000e+30 : f32
    %72 = vector.shape_cast %71 : vector<1x8x8xi1> to vector<1x8x8xi1>
    %73 = vector.broadcast %72 : vector<1x8x8xi1> to vector<4x8x8xi1>
    %74 = vector.broadcast %cst_17 : f32 to vector<4x8x8xf32>
    %75 = arith.select %73, %67, %74 : vector<4x8x8xi1>, vector<4x8x8xf32>
    %cst_18 = arith.constant dense<0xFF800000> : vector<4x8xf32>
    %76 = vector.multi_reduction <maximumf>, %75, %cst_18 [2] : vector<4x8x8xf32> to vector<4x8xf32>
    %77 = vector.shape_cast %76 : vector<4x8xf32> to vector<4x8x1xf32>
    %78 = vector.broadcast %77 : vector<4x8x1xf32> to vector<4x8x8xf32>
    %79 = arith.subf %75, %78 : vector<4x8x8xf32>
    %80 = math.exp %79 : vector<4x8x8xf32>
    %cst_19 = arith.constant dense<0.000000e+00> : vector<4x8xf32>
    %81 = vector.multi_reduction <add>, %80, %cst_19 [2] : vector<4x8x8xf32> to vector<4x8xf32>
    %82 = vector.shape_cast %81 : vector<4x8xf32> to vector<4x8x1xf32>
    %83 = tpu.reciprocal %82 {approx = true} : vector<4x8x1xf32> -> vector<4x8x1xf32>
    %84 = vector.broadcast %83 : vector<4x8x1xf32> to vector<4x8x8xf32>
    %85 = arith.mulf %80, %84 : vector<4x8x8xf32>
    %86 = arith.truncf %85 : vector<4x8x8xf32> to vector<4x8x8xbf16>
    "tpu.trace_start"() <{level = 10 : i32, message = "hqk,hkd->hqd"}> : () -> ()
    %cst_20 = arith.constant dense<0.000000e+00> : vector<4x8x8xf32>
    %87 = tpu.matmul %86, %66, %cst_20 {dimension_numbers = #tpu.dot_dimension_numbers<[2], [1], [1], [2], [0, 0, 0, 1, 1, 2], [0], [0]>} : vector<4x8x8xbf16>, vector<4x8x8xbf16>, vector<4x8x8xf32> -> vector<4x8x8xf32>
    "tpu.trace_stop"() : () -> ()
    %88 = vector.extract_strided_slice %87 {offsets = [0, 0, 0], sizes = [1, 8, 8], strides = [1, 1, 1]} : vector<4x8x8xf32> to vector<1x8x8xf32>
    %89 = vector.shape_cast %88 : vector<1x8x8xf32> to vector<8x8xf32>
    %90 = vector.extract_strided_slice %87 {offsets = [1, 0, 0], sizes = [1, 8, 8], strides = [1, 1, 1]} : vector<4x8x8xf32> to vector<1x8x8xf32>
    %91 = vector.shape_cast %90 : vector<1x8x8xf32> to vector<8x8xf32>
    %92 = vector.extract_strided_slice %87 {offsets = [2, 0, 0], sizes = [1, 8, 8], strides = [1, 1, 1]} : vector<4x8x8xf32> to vector<1x8x8xf32>
    %93 = vector.shape_cast %92 : vector<1x8x8xf32> to vector<8x8xf32>
    %94 = vector.extract_strided_slice %87 {offsets = [3, 0, 0], sizes = [1, 8, 8], strides = [1, 1, 1]} : vector<4x8x8xf32> to vector<1x8x8xf32>
    %95 = vector.shape_cast %94 : vector<1x8x8xf32> to vector<8x8xf32>
    %96 = tpu.concatenate %89, %91, %93, %95 in 1 : vector<8x8xf32>, vector<8x8xf32>, vector<8x8xf32>, vector<8x8xf32> -> vector<8x32xf32>
    %97 = arith.truncf %96 : vector<8x32xf32> to vector<8x32xbf16>
    %c0_21 = arith.constant 0 : index
    %c0_22 = arith.constant 0 : index
    %98 = vector.load %arg3[%c0_21, %c0_22] : memref<32x32xbf16, #tpu.memory_space<vmem>>, vector<32x32xbf16>
    %cst_23 = arith.constant dense<0.000000e+00> : vector<8x32xf32>
    %99 = tpu.matmul %97, %98, %cst_23 {dimension_numbers = #tpu.dot_dimension_numbers<[1], [0], [0], [1], [0, 0, 1, 1], [], []>} : vector<8x32xbf16>, vector<32x32xbf16>, vector<8x32xf32> -> vector<8x32xf32>
    %100 = arith.addf %1, %99 : vector<8x32xf32>
    %101 = vector.extract_strided_slice %3 {offsets = [0, 0], sizes = [1, 32], strides = [1, 1]} : vector<2x32xf32> to vector<1x32xf32>
    %102 = vector.extract_strided_slice %3 {offsets = [1, 0], sizes = [1, 32], strides = [1, 1]} : vector<2x32xf32> to vector<1x32xf32>
    %cst_24 = arith.constant dense<0.000000e+00> : vector<8xf32>
    %103 = vector.multi_reduction <add>, %100, %cst_24 [1] : vector<8x32xf32> to vector<8xf32>
    %104 = vector.shape_cast %103 : vector<8xf32> to vector<8x1xf32>
    %cst_25 = arith.constant 3.200000e+01 : f32
    %105 = vector.broadcast %cst_25 : f32 to vector<8x1xf32>
    %106 = arith.divf %104, %105 : vector<8x1xf32>
    %107 = vector.broadcast %106 : vector<8x1xf32> to vector<8x32xf32>
    %108 = arith.subf %100, %107 : vector<8x32xf32>
    %109 = arith.mulf %108, %108 : vector<8x32xf32>
    %cst_26 = arith.constant dense<0.000000e+00> : vector<8xf32>
    %110 = vector.multi_reduction <add>, %109, %cst_26 [1] : vector<8x32xf32> to vector<8xf32>
    %111 = vector.shape_cast %110 : vector<8xf32> to vector<8x1xf32>
    %cst_27 = arith.constant 3.200000e+01 : f32
    %112 = vector.broadcast %cst_27 : f32 to vector<8x1xf32>
    %113 = arith.divf %111, %112 : vector<8x1xf32>
    %114 = vector.broadcast %106 : vector<8x1xf32> to vector<8x32xf32>
    %115 = arith.subf %100, %114 : vector<8x32xf32>
    %cst_28 = arith.constant 9.99999974E-6 : f32
    %116 = vector.broadcast %cst_28 : f32 to vector<8x1xf32>
    %117 = arith.addf %113, %116 : vector<8x1xf32>
    %118 = math.rsqrt %117 : vector<8x1xf32>
    %119 = vector.broadcast %118 : vector<8x1xf32> to vector<8x32xf32>
    %120 = arith.mulf %115, %119 : vector<8x32xf32>
    %121 = vector.broadcast %101 : vector<1x32xf32> to vector<8x32xf32>
    %122 = arith.mulf %120, %121 : vector<8x32xf32>
    %123 = vector.broadcast %102 : vector<1x32xf32> to vector<8x32xf32>
    %124 = arith.addf %122, %123 : vector<8x32xf32>
    %125 = arith.truncf %124 : vector<8x32xf32> to vector<8x32xbf16>
    %c0_29 = arith.constant 0 : index
    %c0_30 = arith.constant 0 : index
    %126 = vector.load %arg4[%c0_29, %c0_30] : memref<32x64xbf16, #tpu.memory_space<vmem>>, vector<32x64xbf16>
    %cst_31 = arith.constant dense<0.000000e+00> : vector<8x64xf32>
    %127 = tpu.matmul %125, %126, %cst_31 {dimension_numbers = #tpu.dot_dimension_numbers<[1], [0], [0], [1], [0, 0, 1, 1], [], []>} : vector<8x32xbf16>, vector<32x64xbf16>, vector<8x64xf32> -> vector<8x64xf32>
    %128 = arith.mulf %127, %127 : vector<8x64xf32>
    %129 = arith.mulf %127, %128 : vector<8x64xf32>
    %cst_32 = arith.constant 4.471500e-02 : f32
    %130 = vector.broadcast %cst_32 : f32 to vector<8x64xf32>
    %131 = arith.mulf %130, %129 : vector<8x64xf32>
    %132 = arith.addf %127, %131 : vector<8x64xf32>
    %cst_33 = arith.constant 0.797884583 : f32
    %133 = vector.broadcast %cst_33 : f32 to vector<8x64xf32>
    %134 = arith.mulf %133, %132 : vector<8x64xf32>
    %135 = math.tanh %134 : vector<8x64xf32>
    %cst_34 = arith.constant 1.000000e+00 : f32
    %136 = vector.broadcast %cst_34 : f32 to vector<8x64xf32>
    %137 = arith.addf %136, %135 : vector<8x64xf32>
    %cst_35 = arith.constant 5.000000e-01 : f32
    %138 = vector.broadcast %cst_35 : f32 to vector<8x64xf32>
    %139 = arith.mulf %138, %137 : vector<8x64xf32>
    %140 = arith.mulf %127, %139 : vector<8x64xf32>
    %141 = arith.truncf %140 : vector<8x64xf32> to vector<8x64xbf16>
    %c0_36 = arith.constant 0 : index
    %c0_37 = arith.constant 0 : index
    %142 = vector.load %arg5[%c0_36, %c0_37] : memref<64x32xbf16, #tpu.memory_space<vmem>>, vector<64x32xbf16>
    %cst_38 = arith.constant dense<0.000000e+00> : vector<8x32xf32>
    %143 = tpu.matmul %141, %142, %cst_38 {dimension_numbers = #tpu.dot_dimension_numbers<[1], [0], [0], [1], [0, 0, 1, 1], [], []>} : vector<8x64xbf16>, vector<64x32xbf16>, vector<8x32xf32> -> vector<8x32xf32>
    %144 = arith.addf %100, %143 : vector<8x32xf32>
    %145 = vector.extract_strided_slice %4 {offsets = [0, 0], sizes = [1, 32], strides = [1, 1]} : vector<2x32xf32> to vector<1x32xf32>
    %146 = vector.extract_strided_slice %4 {offsets = [1, 0], sizes = [1, 32], strides = [1, 1]} : vector<2x32xf32> to vector<1x32xf32>
    %cst_39 = arith.constant dense<0.000000e+00> : vector<8xf32>
    %147 = vector.multi_reduction <add>, %144, %cst_39 [1] : vector<8x32xf32> to vector<8xf32>
    %148 = vector.shape_cast %147 : vector<8xf32> to vector<8x1xf32>
    %cst_40 = arith.constant 3.200000e+01 : f32
    %149 = vector.broadcast %cst_40 : f32 to vector<8x1xf32>
    %150 = arith.divf %148, %149 : vector<8x1xf32>
    %151 = vector.broadcast %150 : vector<8x1xf32> to vector<8x32xf32>
    %152 = arith.subf %144, %151 : vector<8x32xf32>
    %153 = arith.mulf %152, %152 : vector<8x32xf32>
    %cst_41 = arith.constant dense<0.000000e+00> : vector<8xf32>
    %154 = vector.multi_reduction <add>, %153, %cst_41 [1] : vector<8x32xf32> to vector<8xf32>
    %155 = vector.shape_cast %154 : vector<8xf32> to vector<8x1xf32>
    %cst_42 = arith.constant 3.200000e+01 : f32
    %156 = vector.broadcast %cst_42 : f32 to vector<8x1xf32>
    %157 = arith.divf %155, %156 : vector<8x1xf32>
    %158 = vector.broadcast %150 : vector<8x1xf32> to vector<8x32xf32>
    %159 = arith.subf %144, %158 : vector<8x32xf32>
    %cst_43 = arith.constant 9.99999974E-6 : f32
    %160 = vector.broadcast %cst_43 : f32 to vector<8x1xf32>
    %161 = arith.addf %157, %160 : vector<8x1xf32>
    %162 = math.rsqrt %161 : vector<8x1xf32>
    %163 = vector.broadcast %162 : vector<8x1xf32> to vector<8x32xf32>
    %164 = arith.mulf %159, %163 : vector<8x32xf32>
    %165 = vector.broadcast %145 : vector<1x32xf32> to vector<8x32xf32>
    %166 = arith.mulf %164, %165 : vector<8x32xf32>
    %167 = vector.broadcast %146 : vector<1x32xf32> to vector<8x32xf32>
    %168 = arith.addf %166, %167 : vector<8x32xf32>
    %169 = arith.truncf %168 : vector<8x32xf32> to vector<8x32xbf16>
    %c0_44 = arith.constant 0 : index
    %c0_45 = arith.constant 0 : index
    %c0_46 = arith.constant 0 : index
    %170 = vector.load %arg9[%c0_44, %c0_45, %c0_46] : memref<1x8x32xbf16, #tpu.memory_space<vmem>>, vector<1x8x32xbf16>
    %171 = vector.shape_cast %170 : vector<1x8x32xbf16> to vector<8x32xbf16>
    %172 = vector.shape_cast %169 : vector<8x32xbf16> to vector<1x8x32xbf16>
    tpu.vector_store %arg9[%c0_44, %c0_45, %c0_46], %172 {strides = array<i32>} : memref<1x8x32xbf16, #tpu.memory_space<vmem>>, vector<1x8x32xbf16>,
    return
  }
  func.func @transform_0(%arg0: i32) -> (i32, i32, i32) {
    %c0_i32 = arith.constant 0 : i32
    %c0_i32_0 = arith.constant 0 : i32
    %c0_i32_1 = arith.constant 0 : i32
    return %arg0, %c0_i32, %c0_i32_0 : i32, i32, i32
  }
  func.func @transform_1(%arg0: i32) -> (i32, i32) {
    %c0_i32 = arith.constant 0 : i32
    %c0_i32_0 = arith.constant 0 : i32
    %c0_i32_1 = arith.constant 0 : i32
    return %c0_i32, %c0_i32_0 : i32, i32
  }
  func.func @transform_2(%arg0: i32) -> (i32, i32) {
    %c0_i32 = arith.constant 0 : i32
    %c0_i32_0 = arith.constant 0 : i32
    %c0_i32_1 = arith.constant 0 : i32
    return %c0_i32, %c0_i32_0 : i32, i32
  }
  func.func @transform_3(%arg0: i32) -> (i32, i32) {
    %c0_i32 = arith.constant 0 : i32
    %c0_i32_0 = arith.constant 0 : i32
    %c0_i32_1 = arith.constant 0 : i32
    return %c0_i32, %c0_i32_0 : i32, i32
  }
  func.func @transform_4(%arg0: i32) -> (i32, i32) {
    %c0_i32 = arith.constant 0 : i32
    %c0_i32_0 = arith.constant 0 : i32
    %c0_i32_1 = arith.constant 0 : i32
    return %c0_i32, %c0_i32_0 : i32, i32
  }
  func.func @transform_5(%arg0: i32) -> (i32, i32) {
    %c0_i32 = arith.constant 0 : i32
    %c0_i32_0 = arith.constant 0 : i32
    %c0_i32_1 = arith.constant 0 : i32
    return %c0_i32, %c0_i32_0 : i32, i32
  }
  func.func @transform_6(%arg0: i32) -> (i32, i32) {
    %c0_i32 = arith.constant 0 : i32
    %c0_i32_0 = arith.constant 0 : i32
    %c0_i32_1 = arith.constant 0 : i32
    return %c0_i32, %c0_i32_0 : i32, i32
  }
  func.func @transform_7(%arg0: i32) -> (i32, i32) {
    %c0_i32 = arith.constant 0 : i32
    %c0_i32_0 = arith.constant 0 : i32
    %c0_i32_1 = arith.constant 0 : i32
    return %c0_i32, %c0_i32_0 : i32, i32
  }
  func.func @transform_8(%arg0: i32) -> (i32, i32, i32) {
    %c0_i32 = arith.constant 0 : i32
    %c0_i32_0 = arith.constant 0 : i32
    %c0_i32_1 = arith.constant 0 : i32
    return %arg0, %c0_i32, %c0_i32_0 : i32, i32, i32
  }
}

</mosaic_0001>

<bundles_post_ra>
// kernel: tpu_custom_call.1
= control target key start
LH: loop header
LB: loop body
LE: loop exit
PB: predicated region body
PF: predicated region fallthrough
CT: control target
= control target key end

     0   :  { %13 = vsyncpa [#allocation3], 0  ;;  %s1936_s0 = inlined_call_operand.vmem [shape: f32[2,8,32], index: 0, kind: input, shape index: {}]   ;;  %s1937_s1 = inlined_call_operand.vmem [shape: bf16[32,96], index: 1, kind: input, shape index: {}]   ;;  %s1938_s2 = inlined_call_operand.vmem [shape: bf16[32,32], index: 2, kind: input, shape index: {}]   ;;  %s1939_s3 = inlined_call_operand.hbm [shape: bf16[32,64], index: 3, kind: input, shape index: {}]   ;;  %s1940_s4 = inlined_call_operand.vmem [shape: bf16[64,32], index: 4, kind: input, shape index: {}]   ;;  %s1941_s5 = inlined_call_operand.vmem [shape: f32[2,32], index: 5, kind: input, shape index: {}]   ;;  %s1942_s6 = inlined_call_operand.vmem [shape: f32[2,32], index: 6, kind: input, shape index: {}]   ;;  %s1943_s7 = inlined_call_operand.vmem [shape: f32[2,32], index: 7, kind: input, shape index: {}]   ;;  %s1944_s8 = inlined_call_operand.hbm [shape: bf16[2,8,32], index: 8, kind: output, shape index: {}]  }
   0x1   :  { %14 = vsyncpa [#allocation4], 0 }
   0x2   :  { %16 = vsyncpa [#allocation4 + $0x1], 0  ;;  %s1642_s27 = smov 0   ;;  %s1644_s28 = smov 0  }
   0x3   :  { %s1646_s29 = smov 0   ;;  %s1648_s30 = smov 0  }
   0x4 LB: > { %s1663_s9 = sadd.s32 4294967295, %s1581_s30   ;;  %s1243_s10 = sadd.s32 4294967294, %s1581_s30   ;;  %s1581_s30 = sphi %s1648_s30, %s1960_s30   ;;  %s1577_s29 = sphi %s1646_s29, %s1959_s29   ;;  %s1573_s28 = sphi %s1644_s28, %s1958_s28   ;;  %s1569_s27 = sphi %s1642_s27, %s1957_s27  }
   0x5   : > { %s1667_s11 = sadd.s32 1, %s1581_s30   ;;  %s202_s12 = sadd.s32 1, %s1577_s29 }
   0x6   : > { %s199_s13 = ssub.s32 %s1581_s30, %s1667_s11  ;;  %p212_p0 = scmp.ne.s32.totalorder %s1577_s29, %s1573_s28 }
   0x7   : > { %p200_p1 = scmp.eq.s32.totalorder %s199_s13, 0  ;;  %p213_p2 = scmp.eq.s32.totalorder %s1663_s9, 1 }
   0x8   : > { %p218_p3 = scmp.ne.s32.totalorder %s1573_s28, %s1569_s27  ;;  %p219_p4 = scmp.eq.s32.totalorder %s1243_s10, 1 }
   0x9   : > { %s1678_s14 = scalar_select %p200_p1, %s1577_s29, %s202_s12  }
   0xa   : > { %p1680_p5 = por %p213_p2, %p212_p0  ;;  %p1684_p6 = por %p219_p4, %p218_p3 }
   0xb   : > { %p1244_p7 = scmp.ge.s32.totalorder %s1581_s30, 1  ;;  %p226_p8 = scmp.lt.s32.totalorder %s1581_s30, 3 }
   0xc   : > { %s1948_s15 = scalar_select %p1680_p5, 1, 0 }
   0xd   : > { %s1949_s16 = scalar_select %p1684_p6, 1, 0 }
   0xe   : > { %p1945_p9 = scmp.eq.s32.totalorder %s1663_s9, 0  ;;  %p1691_p10 = pnand %p1244_p7, %p226_p8 }
   0xf   : > { %s1583_s18 = smov [#allocation2]   ;;  %s1487_s23 = scalar_lea.hbm %s1939_s3, 256 }
  0x10   : > { %s1950_s17 = scalar_select %p1691_p10, 1, 0 }
  0x11   : > { %s244_s19 = sshll.u32 %s1583_s18, 4  ;;  %p1397_p11 = pneg %p1691_p10  ;;  %s245_s19 = int_to_ptr.vmem [resolvable:$true] %s244_s19 }
  0x12   : > { %p1488_p13 = scmp.ne.s32.totalorder %s1939_s3, %s1487_s23  ;;  %p1494_p3 = scmp.lt.u32.totalorder %s1487_s23, %s1939_s3 }
  0x13   : > { %p1699_p12 = pnand %p1945_p9, %p1397_p11 }
  0x15   : > { %p1489_p0 = pneg %p1699_p12 }
  0x17   : > { %p1490_p1 = pnand %p1489_p0, %p1488_p13 }
  0x19   : > { %p1491_p2 = pneg %p1490_p1 }
  0x1b   : > { %p1496_p4 = pnand %p1494_p3, %p1491_p2 }
  0x1d   : > { %1499 = shalt.err (!%p1496_p4)
}
  0x1e   : > { %s1500_s12 = scalar_lea.vmem %s245_s19, 256  ;;  %p1508_p9 = scmp.lt.s32.totalorder %s245_s19, %s245_s19 }
  0x1f   : > { %p1501_p7 = scmp.ne.s32.totalorder %s245_s19, %s1500_s12  ;;  %p1509_p6 = scmp.lt.s32.totalorder %s1500_s12, %s1500_s12 }
  0x21   : > { %p1503_p8 = pnand %p1501_p7, %p1489_p0  ;;  %p1510_p5 = por %p1509_p6, %p1508_p9 }
  0x23   : > { %p1504_p11 = pneg %p1503_p8 }
  0x25   : > { %p1511_p10 = pnand %p1510_p5, %p1504_p11 }
  0x27   : > { %1514 = shalt.err (!%p1511_p10)
}
  0x28   : > { %s1584_s13 = smov 64   ;;  %s1585_s18 = smov 4  }
  0x29   : > { %1400 = dma.hbm_to_vmem [thread:$0]  (!%p1699_p12), %s1939_s3, 256, %s245_s19, [#allocation3], %s1584_s13, %s1584_s13, %s1585_s18  }
  0x2a   : > { %p1952_p13 = scmp.ne.s32.totalorder %s1950_s17, 0 }
  0x2b   : > { %p1953_p1 = scmp.eq.s32.totalorder (!%p1952_p13), %s1663_s9, 0 }
  0x2c   : > { %279 = sbr.rel (%p1952_p13) target bundleno = 3006 (0xbbe), region = 52 }
  0x33   : > { %1560 = dma.done.wait (%p1953_p1), [#allocation3], 256   ;;  %p1954_p0 = pmov %p1953_p1 }
  0x34   : > { %p312_p5 = scmp.lt.s32.totalorder %s1663_s9, 1  ;;  %vm321_vm0 = vcmask 261120   ;;  %v1453_v7 = vld [vmem:[%s1937_s1] sm:$0xff]   ;;  %v1586_v8 = vmov 0.0   ;;  %vm1587_vm1 = vmmov 0   ;;  %v1454_v9 = vld [vmem:[%s1937_s1 + $0x8] sm:$0xff]   ;;  %v336_v12 = vlaneseq }
  0x35   : > { %1562 = vsyncadd (%p1954_p0), [#allocation3], 4294967040  ;;  %1307 = vmatprep.subr.bf16.mxu0 %v1586_v8  ;;  %1311 = vmatprep.mubr.msk.bf16.mxu0 %vm1587_vm1, %v1586_v8  ;;  %v318_v16 = vld [vmem:[%s1941_s5] sm:$0x3]  ;;  %s1588_s21 = smov 104   ;;  %s1589_s22 = smov 120  }
  0x36   : > { %s313_s23 = scalar_select %p312_p5, %s1663_s9, 1  ;;  %1308 = vmatpush3.bf16.msra.mxu0 %v1453_v7  ;;  %1315 = vmatprep.subr.bf16.mxu1 %v1586_v8  ;;  %v1751_v14 = vshrl.u32 %v336_v12, 7  ;;  %vm438_vm2 = vcmask 64512   ;;  %v635_v52 = vand.u32 127, %v336_v12  ;;  %vm696_vm4 = vcmask 1043456  }
  0x37   : > { %1309 = vmatprep.subr.bf16.mxu0 %v1586_v8  ;;  %1317 = vmatprep.mubr.msk.bf16.mxu1 %vm1587_vm1, %v1586_v8  ;;  %s1592_s25 = smov 64   ;;  %s1593_s10 = smov 8   ;;  %vm897_vm5 = vcmask 130048   ;;  %vm899_vm6 = vcmask 195584   ;;  %vm1087_vm7 = vcmask 523264   ;;  %vm1156_vm8 = vcmask 257024  }
  0x38   : > { %s1250_s24 = sshll.u32 %s313_s23, 3  ;;  %v1754_v15 = vsub.s32 0, %v1751_v14  ;;  %v1760_v17 = vsub.s32 1, %v1751_v14  ;;  %s1590_s23 = smov 112   ;;  %vm636_vm3 = vcmp.le.s32.totalorder %v635_v52, %v1751_v14 }
  0x39   : > { %s315_s26 = scalar_lea.vmem %s1936_s0, %s1250_s24  ;;  %s1591_s24 = smov 96  }
  0x3a   : > { %v1730_v0 = vld [vmem:[%s315_s26] sm:$0xff]  ;;  %1310 = vmatpush3.bf16.msra.mxu0 %v1454_v9  ;;  %v339_v18 = vrot.slane %v318_v16, %v1754_v15  ;;  %v344_v21 = vrot.slane %v318_v16, %v1760_v17  ;;  %s1594_s12 = smov 16   ;;  %s1595_s13 = smov 24  }
  0x3b   : > { %v322_v1 = vsel %vm321_vm0, %v1730_v0, 0.0  ;;  %1321 = vmatprep.subr.bf16.mxu0 %v1586_v8  ;;  %p1955_p9 = scmp.ne.s32.totalorder %s1948_s15, 0 }
  0x3c   : > { %323 = vadd.xlane.f32.xlu0 %v322_v1 }
  0xc9   : > { %v324_v2 = vpop.xlane.xlu0 %323 }
  0xca   : > { %v326_v3 = vmul.f32 0.03125, %v324_v2 }
  0xcc   : > { %v327_v4 = vsub.f32 %v1730_v0, %v326_v3 }
  0xce   : > { %v328_v5 = vmul.f32 %v327_v4, %v327_v4 }
  0xd0   : > { %v329_v6 = vsel %vm321_vm0, %v328_v5, 0.0 }
  0xd1   : > { %330 = vadd.xlane.f32.xlu0 %v329_v6 }
 0x15e   : > { %v331_v10 = vpop.xlane.xlu0 %330 }
 0x15f   : > { %v332_v11 = vmul.f32 0.03125, %v331_v10 }
 0x161   : > { %v333_v13 = vadd.f32 1e-05, %v332_v11 }
 0x163   : > { %1463 = vrsqrt.f32 %v333_v13 }
 0x16d   : > { %v1464_v19 = vpop.eup %1463 }
 0x16e   : > { %v335_v20 = vmul.f32 %v1464_v19, %v327_v4 }
 0x170   : > { %v340_v22 = vmul.f32 %v339_v18, %v335_v20 }
 0x172   : > { %v345_v23 = vadd.f32 %v344_v21, %v340_v22 }
 0x174   : > { %v346_v24 = vpack.c.bf16 %v345_v23, %v345_v23 }
 0x176   : > { %1312 = vmatmul.mubr.msk.bf16.vlgmr.msra.gmra.mrb[0].mxu0 %vm321_vm0, %v346_v24 }
 0x177   : > { %1323 = vmatprep.mubr.msk.bf16.mxu0 %vm1587_vm1, %v1586_v8 }
 0x249   : > { %v400_v25 = vpop.f32.mrb[0].mxu0 }
 0x24a   : > { %428 = vrot.lane.b32.xlu0 %v400_v25, %s1588_s21  ;;  %422 = vrot.lane.b32.xlu1 %v400_v25, %s1589_s22  ;;  %v1313_v26 = vpop.f32.mrb[1].mxu0  ;;  %v406_v29 = vmul.f32 0.35355338, %v400_v25  ;;  %v1767_v30 = vpack.c.bf16 %v400_v25, %v400_v25 }
 0x24b   : > { %v403_v27 = vpop.f32.mrb[2].mxu0 }
 0x24c   : > { %v1314_v28 = vpop.f32.mrb[3].mxu0  ;;  %v417_v39 = vpack.c.bf16 %v406_v29, %v406_v29 }
 0x24e   : > { %425 = vrot.lane.b32.xlu1 %v400_v25, %s1590_s23  ;;  %414 = vrot.lane.b32.xlu0 %v406_v29, %s1588_s21  ;;  %s1274_s21 = sshll.u32 %s1663_s9, 6  ;;  %s1596_s9 = smov [#allocation5]  }
 0x24f   : > { %s1894_s20 = scalar_lea.hbm %s1944_s8, %s1274_s21  ;;  %s1519_s19 = sshll.u32 %s1596_s9, 4  ;;  %s1520_s19 = int_to_ptr.vmem [resolvable:$false] %s1519_s19 }
 0x252   : > { %436 = vrot.lane.b32.xlu1 %v1767_v30, %s1591_s24 }
 0x256   : > { %408 = vrot.lane.b32.xlu1 %v406_v29, %s1589_s22 }
 0x2bc   : > { %v423_v31 = vpop.permute.xlu1 %422  ;;  %v429_v35 = vpop.permute.xlu0 %428 }
 0x2bd   : > { %v1770_v32 = vpack.c.bf16 %v423_v31, %v423_v31  ;;  %v1776_v37 = vpack.c.bf16 %v429_v35, %v429_v35 }
 0x2bf   : > { %486 = vrot.lane.b32.xlu1 %v1770_v32, %s1591_s24 }
 0x2c0   : > { %v426_v33 = vpop.permute.xlu1 %425  ;;  %v415_v48 = vpop.permute.xlu0 %414 }
 0x2c1   : > { %v1773_v34 = vpack.c.bf16 %v426_v33, %v426_v33  ;;  %v420_v51 = vpack.c.bf16 %v415_v48, %v415_v48 }
 0x2c3   : > { %535 = vrot.lane.b32.xlu1 %v1773_v34, %s1591_s24 }
 0x2c4   : > { %v437_v36 = vpop.permute.xlu1 %436 }
 0x2c5   : > { %v443_v38 = vsel %vm438_vm2, %v437_v36, 0 }
 0x2c6   : > { %1316 = vmatpush3.bf16.xpose.msra.mxu1 %v443_v38 }
 0x2c7   : > { %584 = vrot.lane.b32.xlu1 %v1776_v37, %s1591_s24  ;;  %1327 = vmatprep.subr.bf16.mxu1 %v1586_v8 }
 0x2c8   : > { %v409_v40 = vpop.permute.xlu1 %408 }
 0x2c9   : > { %v418_v45 = vpack.c.bf16 %v409_v40, %v409_v40 }
 0x2cb   : > { %411 = vrot.lane.b32.xlu1 %v406_v29, %s1590_s23 }
 0x2cd   : > { %1318 = vmatmul.mubr.msk.bf16.vlgmr.msra.gmra.mrb[0].mxu1 %vm438_vm2, %v417_v39 }
 0x2ce   : > { %1329 = vmatprep.mubr.msk.bf16.mxu1 %vm1587_vm1, %v1586_v8 }
 0x331   : > { %v487_v41 = vpop.permute.xlu1 %486 }
 0x332   : > { %v492_v42 = vsel %vm438_vm2, %v487_v41, 0 }
 0x333   : > { %1322 = vmatpush3.bf16.xpose.msra.mxu0 %v492_v42 }
 0x334   : > { %1333 = vmatprep.subr.bf16.mxu0 %v1586_v8 }
 0x335   : > { %v536_v43 = vpop.permute.xlu1 %535 }
 0x336   : > { %v541_v44 = vsel %vm438_vm2, %v536_v43, 0 }
 0x337   : > { %1328 = vmatpush3.bf16.xpose.msra.mxu1 %v541_v44 }
 0x338   : > { %1339 = vmatprep.subr.bf16.mxu1 %v1586_v8 }
 0x339   : > { %v585_v46 = vpop.permute.xlu1 %584 }
 0x33a   : > { %v590_v47 = vsel %vm438_vm2, %v585_v46, 0  ;;  %1324 = vmatmul.mubr.msk.bf16.vlgmr.msra.gmra.mrb[4].mxu0 %vm438_vm2, %v418_v45 }
 0x33b   : > { %1334 = vmatpush3.bf16.xpose.msra.mxu0 %v590_v47  ;;  %1335 = vmatprep.mubr.msk.bf16.mxu0 %vm1587_vm1, %v1586_v8 }
 0x33c   : > { %1345 = vmatprep.subr.bf16.mxu0 %v1586_v8 }
 0x33d   : > { %v412_v49 = vpop.permute.xlu1 %411 }
 0x33e   : > { %v419_v50 = vpack.c.bf16 %v412_v49, %v412_v49 }
 0x340   : > { %1330 = vmatmul.mubr.msk.bf16.vlgmr.msra.gmra.mrb[4].mxu1 %vm438_vm2, %v419_v50 }
 0x341   : > { %1341 = vmatprep.mubr.msk.bf16.mxu1 %vm1587_vm1, %v1586_v8 }
 0x342   : > { %1336 = vmatmul.mubr.msk.bf16.vlgmr.msra.gmra.mrb[8].mxu0 %vm438_vm2, %v420_v51 }
 0x343   : > { %1347 = vmatprep.mubr.msk.bf16.mxu0 %vm1587_vm1, %v1586_v8 }
 0x3a0   : > { %v479_v53 = vpop.f32.mrb[0].mxu1 }
 0x3a1   : > { %v639_v54 = vsel %vm636_vm3, %v479_v53, -1e+30  ;;  %v1319_v55 = vpop.f32.mrb[1].mxu1 }
 0x3a2   : > { %v482_v56 = vpop.f32.mrb[2].mxu1  ;;  %v643_v57 = vsel %vm438_vm2, %v639_v54, -inf }
 0x3a3   : > { %644 = vmax.xlane.f32.xlu1 %v643_v57  ;;  %v1320_v58 = vpop.f32.mrb[3].mxu1 }
 0x40d   : > { %v528_v59 = vpop.f32.mrb[4].mxu0 }
 0x40e   : > { %v640_v60 = vsel %vm636_vm3, %v528_v59, -1e+30  ;;  %v1325_v61 = vpop.f32.mrb[5].mxu0 }
 0x40f   : > { %v531_v62 = vpop.f32.mrb[6].mxu0  ;;  %v646_v63 = vsel %vm438_vm2, %v640_v60, -inf }
 0x410   : > { %647 = vmax.xlane.f32.xlu0 %v646_v63  ;;  %v1326_v1 = vpop.f32.mrb[7].mxu0 }
 0x413   : > { %v577_v2 = vpop.f32.mrb[4].mxu1 }
 0x414   : > { %v641_v3 = vsel %vm636_vm3, %v577_v2, -1e+30  ;;  %v1331_v4 = vpop.f32.mrb[5].mxu1  ;;  %v1455_v2 = vld [vmem:[%s1938_s2] sm:$0xff]  }
 0x415   : > { %v580_v5 = vpop.f32.mrb[6].mxu1  ;;  %v626_v6 = vpop.f32.mrb[8].mxu0  ;;  %v649_v7 = vsel %vm438_vm2, %v641_v3, -inf }
 0x416   : > { %v642_v9 = vsel %vm636_vm3, %v626_v6, -1e+30  ;;  %v1332_v10 = vpop.f32.mrb[7].mxu1  ;;  %650 = vmax.xlane.f32.xlu0 %v649_v7  ;;  %v1337_v11 = vpop.f32.mrb[9].mxu0 }
 0x417   : > { %v629_v12 = vpop.f32.mrb[10].mxu0  ;;  %v652_v13 = vsel %vm438_vm2, %v642_v9, -inf }
 0x418   : > { %653 = vmax.xlane.f32.xlu1 %v652_v13  ;;  %v1338_v16 = vpop.f32.mrb[11].mxu0 }
 0x429   : > { %740 = vrot.lane.b32.xlu1 %v1770_v32, %s1592_s25 }
 0x42c   : > { %691 = vrot.lane.b32.xlu0 %v1767_v30, %s1592_s25 }
 0x430   : > { %v645_v18 = vpop.xlane.xlu1 %644 }
 0x431   : > { %v655_v19 = vsub.f32 %v639_v54, %v645_v18 }
 0x433   : > { %v659_v20 = vmul.f32 1.442695, %v655_v19 }
 0x435   : > { %1465 = vpow2.f32 %v659_v20 }
 0x43f   : > { %v1466_v14 = vpop.eup %1465 }
 0x440   : > { %v667_v21 = vsel %vm438_vm2, %v1466_v14, 0.0 }
 0x44b   : > { %668 = vadd.xlane.f32.xlu0 %v667_v21 }
 0x49d   : > { %v648_v22 = vpop.xlane.xlu0 %647 }
 0x49e   : > { %v656_v23 = vsub.f32 %v640_v60, %v648_v22 }
 0x4a0   : > { %v661_v24 = vmul.f32 1.442695, %v656_v23 }
 0x4a2   : > { %1467 = vpow2.f32 %v661_v24 }
 0x4a3   : > { %v651_v25 = vpop.xlane.xlu0 %650 }
 0x4a4   : > { %v657_v26 = vsub.f32 %v641_v3, %v651_v25  ;;  %v1456_v3 = vld [vmem:[%s1938_s2 + $0x8] sm:$0xff]  }
 0x4a5   : > { %v654_v27 = vpop.xlane.xlu1 %653 }
 0x4a6   : > { %v663_v28 = vmul.f32 1.442695, %v657_v26  ;;  %v658_v29 = vsub.f32 %v642_v9, %v654_v27 }
 0x4a7   : > { %v692_v31 = vpop.permute.xlu0 %691 }
 0x4a8   : > { %1469 = vpow2.f32 %v663_v28  ;;  %v665_v30 = vmul.f32 1.442695, %v658_v29  ;;  %v698_v32 = vsel %vm696_vm4, %v692_v31, 0 }
 0x4a9   : > { %1340 = vmatpush3.bf16.msra.mxu1 %v698_v32  ;;  %v741_v33 = vpop.permute.xlu1 %740 }
 0x4aa   : > { %1471 = vpow2.f32 %v665_v30  ;;  %v746_v35 = vsel %vm696_vm4, %v741_v33, 0  ;;  %1351 = vmatprep.subr.bf16.mxu1 %v1586_v8 }
 0x4ab   : > { %1346 = vmatpush3.bf16.msra.mxu0 %v746_v35 }
 0x4ac   : > { %v1468_v36 = vpop.eup %1467  ;;  %1357 = vmatprep.subr.bf16.mxu0 %v1586_v8 }
 0x4ad   : > { %v670_v38 = vsel %vm438_vm2, %v1468_v36, 0.0 }
 0x4ae   : > { %671 = vadd.xlane.f32.xlu1 %v670_v38 }
 0x4b2   : > { %v1470_v39 = vpop.eup %1469 }
 0x4b3   : > { %v673_v40 = vsel %vm438_vm2, %v1470_v39, 0.0 }
 0x4b4   : > { %v1472_v41 = vpop.eup %1471  ;;  %674 = vadd.xlane.f32.xlu0 %v673_v40  ;;  %v1458_v40 = vld [vmem:[#allocation2 + $0x8] sm:$0xff]  }
 0x4b5   : > { %v676_v42 = vsel %vm438_vm2, %v1472_v41, 0.0 }
 0x4b6   : > { %677 = vadd.xlane.f32.xlu1 %v676_v42 }
 0x4c7   : > { %788 = vrot.lane.b32.xlu1 %v1773_v34, %s1592_s25 }
 0x4ca   : > { %836 = vrot.lane.b32.xlu0 %v1776_v37, %s1592_s25 }
 0x4d8   : > { %v669_v43 = vpop.xlane.xlu0 %668 }
 0x4d9   : > { %1473 = vrcp.f32 %v669_v43  ;;  %v319_v43 = vld [vmem:[%s1942_s6] sm:$0x3] }
 0x4e3   : > { %v1474_v44 = vpop.eup %1473 }
 0x4e4   : > { %v683_v45 = vmul.f32 %v1474_v44, %v1466_v14  ;;  %v978_v44 = vrot.slane %v319_v43, %v1754_v15 }
 0x4e6   : > { %v687_v46 = vpack.c.bf16 %v683_v45, %v683_v45 }
 0x4e8   : > { %1342 = vmatmul.mubr.msk.bf16.vlgmr.msra.gmra.mrb[8].mxu1 %vm438_vm2, %v687_v46 }
 0x4e9   : > { %1353 = vmatprep.mubr.msk.bf16.mxu1 %vm1587_vm1, %v1586_v8 }
 0x53b   : > { %v672_v47 = vpop.xlane.xlu1 %671 }
 0x53c   : > { %1475 = vrcp.f32 %v672_v47  ;;  %v983_v47 = vrot.slane %v319_v43, %v1760_v17 }
 0x541   : > { %v675_v48 = vpop.xlane.xlu0 %674 }
 0x542   : > { %1477 = vrcp.f32 %v675_v48 }
 0x543   : > { %v678_v49 = vpop.xlane.xlu1 %677 }
 0x544   : > { %1479 = vrcp.f32 %v678_v49 }
 0x545   : > { %v837_v37 = vpop.permute.xlu0 %836 }
 0x546   : > { %v1476_v34 = vpop.eup %1475  ;;  %v842_v54 = vsel %vm696_vm4, %v837_v37, 0  ;;  %v1461_v37 = vld [vmem:[%s1940_s4 + $0x10] sm:$0xff]  }
 0x547   : > { %v684_v50 = vmul.f32 %v1476_v34, %v1468_v36  ;;  %v789_v51 = vpop.permute.xlu1 %788 }
 0x548   : > { %v794_v52 = vsel %vm696_vm4, %v789_v51, 0  ;;  %v1460_v51 = vld [vmem:[%s1940_s4 + $0x8] sm:$0xff]  }
 0x549   : > { %1352 = vmatpush3.bf16.msra.mxu1 %v794_v52  ;;  %v688_v53 = vpack.c.bf16 %v684_v50, %v684_v50  ;;  %v1459_v50 = vld [vmem:[%s1940_s4] sm:$0xff]   ;;  %v1462_v52 = vld [vmem:[%s1940_s4 + $0x18] sm:$0xff]  }
 0x54a   : > { %1363 = vmatprep.subr.bf16.mxu1 %v1586_v8 }
 0x54b   : > { %1348 = vmatmul.mubr.msk.bf16.vlgmr.msra.gmra.mrb[12].mxu0 %vm438_vm2, %v688_v53 }
 0x54c   : > { %v1478_v55 = vpop.eup %1477  ;;  %1358 = vmatpush3.bf16.msra.mxu0 %v842_v54  ;;  %1359 = vmatprep.mubr.msk.bf16.mxu0 %vm1587_vm1, %v1586_v8 }
 0x54d   : > { %v685_v56 = vmul.f32 %v1478_v55, %v1470_v39  ;;  %1371 = vmatprep.subr.bf16.mxu0 %v1586_v8  ;;  %v1457_v39 = vld [vmem:[#allocation2] sm:$0xff]  }
 0x54e   : > { %v1480_v57 = vpop.eup %1479 }
 0x54f   : > { %v686_v58 = vmul.f32 %v1480_v57, %v1472_v41  ;;  %v689_v59 = vpack.c.bf16 %v685_v56, %v685_v56 }
 0x551   : > { %1354 = vmatmul.mubr.msk.bf16.vlgmr.msra.gmra.mrb[12].mxu1 %vm438_vm2, %v689_v59  ;;  %v690_v60 = vpack.c.bf16 %v686_v58, %v686_v58 }
 0x552   : > { %1367 = vmatprep.mubr.msk.bf16.mxu1 %vm1587_vm1, %v1586_v8  ;;  %1364 = vmatpush3.bf16.msra.mxu1 %v1455_v2 }
 0x553   : > { %1360 = vmatmul.mubr.msk.bf16.vlgmr.msra.gmra.mrb[16].mxu0 %vm438_vm2, %v690_v60  ;;  %1365 = vmatprep.subr.bf16.mxu1 %v1586_v8 }
 0x554   : > { %1375 = vmatprep.mubr.msk.bf16.mxu0 %vm1587_vm1, %v1586_v8  ;;  %1372 = vmatpush3.bf16.msra.mxu0 %v1457_v39 }
 0x555   : > { %1373 = vmatprep.subr.bf16.mxu0 %v1586_v8 }
 0x556   : > { %1366 = vmatpush3.bf16.msra.mxu1 %v1456_v3 }
 0x557   : > { %1379 = vmatprep.subr.bf16.mxu1 %v1586_v8 }
 0x558   : > { %1374 = vmatpush3.bf16.msra.mxu0 %v1458_v40 }
 0x5bb   : > { %v734_v61 = vpop.f32.mrb[8].mxu1 }
 0x5bc   : > { %v1343_v62 = vpop.f32.mrb[9].mxu1 }
 0x5bd   : > { %v737_v63 = vpop.f32.mrb[10].mxu1 }
 0x5be   : > { %v1344_v1 = vpop.f32.mrb[11].mxu1 }
 0x61e   : > { %v782_v4 = vpop.f32.mrb[12].mxu0 }
 0x61f   : > { %885 = vrot.lane.b32.xlu1 %v782_v4, %s1593_s10  ;;  %v1349_v5 = vpop.f32.mrb[13].mxu0  ;;  %s309_s10 = sand.u32 1, %s1573_s28  }
 0x620   : > { %v785_v6 = vpop.f32.mrb[14].mxu0  ;;  %s1249_s18 = sshll.u32 %s309_s10, 2  ;;  %s1159_s26 = scalar_lea.sflag [#allocation4], %s309_s10 }
 0x621   : > { %v1350_v7 = vpop.f32.mrb[15].mxu0  ;;  %s311_s22 = scalar_lea.vmem [#allocation5], %s1249_s18 }
 0x622   : > { %s1172_s23 = sshll.u32 %s311_s22, 4  ;;  %s1896_s23 = int_to_ptr.vmem [resolvable:$true] %s1172_s23 }
 0x623   : > { %s1515_s17 = scalar_lea.vmem %s1896_s23, 64  ;;  %p1522_p2 = scmp.lt.s32.totalorder %s1896_s23, %s1520_s19 }
 0x624   : > { %v830_v9 = vpop.f32.mrb[12].mxu1  ;;  %p1516_p6 = scmp.ne.s32.totalorder %s1896_s23, %s1515_s17 }
 0x625   : > { %889 = vrot.lane.b32.xlu0 %v830_v9, %s1594_s12  ;;  %v1355_v10 = vpop.f32.mrb[13].mxu1  ;;  %s1521_s12 = scalar_lea.vmem %s1520_s19, 128 }
 0x626   : > { %v833_v11 = vpop.f32.mrb[14].mxu1  ;;  %v878_v12 = vpop.f32.mrb[16].mxu0  ;;  %p1517_p10 = pnand %p1516_p6, %p1955_p9  ;;  %p1523_p3 = scmp.lt.s32.totalorder %s1521_s12, %s1515_s17 }
 0x627   : > { %v1356_v13 = vpop.f32.mrb[15].mxu1  ;;  %893 = vrot.lane.b32.xlu1 %v878_v12, %s1595_s13  ;;  %v1361_v16 = vpop.f32.mrb[17].mxu0 }
 0x628   : > { %v881_v18 = vpop.f32.mrb[18].mxu0  ;;  %p1518_p12 = pneg %p1517_p10  ;;  %p1524_p4 = por %p1523_p3, %p1522_p2 }
 0x629   : > { %v1362_v19 = vpop.f32.mrb[19].mxu0 }
 0x62a   : > { %p1525_p7 = pnand %p1524_p4, %p1518_p12 }
 0x691   : > { %v886_v20 = vpop.permute.xlu1 %885 }
 0x692   : > { %v896_v14 = vsel %vm438_vm2, %v734_v61, %v886_v20 }
 0x697   : > { %v890_v21 = vpop.permute.xlu0 %889 }
 0x698   : > { %v898_v22 = vsel %vm897_vm5, %v896_v14, %v890_v21  ;;  %v320_v14 = vld [vmem:[%s1943_s7] sm:$0x3] }
 0x699   : > { %v894_v23 = vpop.permute.xlu1 %893  ;;  %v1148_v21 = vrot.slane %v320_v14, %v1754_v15 }
 0x69a   : > { %v900_v24 = vsel %vm899_vm6, %v898_v22, %v894_v23 }
 0x69b   : > { %v901_v25 = vpack.c.bf16 %v900_v24, %v900_v24  ;;  %v1153_v24 = vrot.slane %v320_v14, %v1760_v17 }
 0x69d   : > { %1368 = vmatmul.mubr.msk.bf16.vlgmr.msra.gmra.mrb[16].mxu1 %vm321_vm0, %v901_v25 }
 0x69e   : > { %1387 = vmatprep.mubr.msk.bf16.mxu1 %vm1587_vm1, %v1586_v8  ;;  %1380 = vmatpush3.bf16.msra.mxu1 %v1459_v50 }
 0x69f   : > { %1381 = vmatprep.subr.bf16.mxu1 %v1586_v8 }
 0x6a2   : > { %1382 = vmatpush3.bf16.msra.mxu1 %v1460_v51 }
 0x6a3   : > { %1383 = vmatprep.subr.bf16.mxu1 %v1586_v8 }
 0x6a6   : > { %1384 = vmatpush3.bf16.msra.mxu1 %v1461_v37 }
 0x6a7   : > { %1385 = vmatprep.subr.bf16.mxu1 %v1586_v8 }
 0x6aa   : > { %1386 = vmatpush3.bf16.msra.mxu1 %v1462_v52 }
 0x770   : > { %v955_v26 = vpop.f32.mrb[16].mxu1 }
 0x771   : > { %v961_v27 = vadd.f32 %v955_v26, %v1730_v0  ;;  %v1369_v28 = vpop.f32.mrb[17].mxu1 }
 0x772   : > { %v958_v29 = vpop.f32.mrb[18].mxu1 }
 0x773   : > { %v1370_v31 = vpop.f32.mrb[19].mxu1  ;;  %v962_v30 = vsel %vm321_vm0, %v961_v27, 0.0 }
 0x774   : > { %963 = vadd.xlane.f32.xlu0 %v962_v30 }
 0x801   : > { %v964_v32 = vpop.xlane.xlu0 %963 }
 0x802   : > { %v965_v33 = vmul.f32 0.03125, %v964_v32 }
 0x804   : > { %v966_v35 = vsub.f32 %v961_v27, %v965_v33 }
 0x806   : > { %v967_v36 = vmul.f32 %v966_v35, %v966_v35 }
 0x808   : > { %v968_v38 = vsel %vm321_vm0, %v967_v36, 0.0 }
 0x809   : > { %969 = vadd.xlane.f32.xlu1 %v968_v38 }
 0x896   : > { %v970_v0 = vpop.xlane.xlu1 %969 }
 0x897   : > { %v971_v41 = vmul.f32 0.03125, %v970_v0 }
 0x899   : > { %v972_v42 = vadd.f32 1e-05, %v971_v41 }
 0x89b   : > { %1481 = vrsqrt.f32 %v972_v42 }
 0x8a5   : > { %v1482_v45 = vpop.eup %1481 }
 0x8a6   : > { %v974_v46 = vmul.f32 %v1482_v45, %v966_v35 }
 0x8a8   : > { %v979_v48 = vmul.f32 %v978_v44, %v974_v46 }
 0x8aa   : > { %v984_v49 = vadd.f32 %v983_v47, %v979_v48 }
 0x8ac   : > { %v985_v34 = vpack.c.bf16 %v984_v49, %v984_v49 }
 0x8ae   : > { %1376 = vmatmul.mubr.msk.bf16.vlgmr.msra.gmra.mrb[20].mxu0 %vm321_vm0, %v985_v34 }
 0x981   : > { %v1039_v53 = vpop.f32.mrb[20].mxu0 }
 0x982   : > { %v1045_v54 = vmul.f32 %v1039_v53, %v1039_v53  ;;  %v1377_v55 = vpop.f32.mrb[21].mxu0 }
 0x983   : > { %v1042_v56 = vpop.f32.mrb[22].mxu0 }
 0x984   : > { %v1046_v57 = vmul.f32 %v1045_v54, %v1039_v53  ;;  %v1378_v58 = vpop.f32.mrb[23].mxu0 }
 0x986   : > { %v1047_v59 = vmul.f32 0.044715, %v1046_v57 }
 0x988   : > { %v1048_v60 = vadd.f32 %v1047_v59, %v1039_v53 }
 0x98a   : > { %v1049_v61 = vmul.f32 0.7978846, %v1048_v60 }
 0x98c   : > { %1483 = vtanh.f32 %v1049_v61 }
 0x996   : > { %v1484_v62 = vpop.eup %1483 }
 0x997   : > { %v1051_v63 = vadd.f32 1.0, %v1484_v62 }
 0x999   : > { %v1052_v1 = vmul.f32 0.5, %v1051_v63 }
 0x99b   : > { %v1053_v2 = vmul.f32 %v1052_v1, %v1039_v53 }
 0x99d   : > { %v1054_v8 = vpack.c.bf16 %v1053_v2, %v1053_v2 }
 0x99f   : > { %1388 = vmatmul.mubr.msk.bf16.vlgmr.msra.gmra.mrb[20].mxu1 %vm1087_vm7, %v1054_v8 }
 0xa72   : > { %v1125_v3 = vpop.f32.mrb[20].mxu1 }
 0xa73   : > { %v1131_v4 = vadd.f32 %v1125_v3, %v961_v27  ;;  %v1389_v5 = vpop.f32.mrb[21].mxu1 }
 0xa74   : > { %v1128_v6 = vpop.f32.mrb[22].mxu1 }
 0xa75   : > { %v1390_v7 = vpop.f32.mrb[23].mxu1  ;;  %v1132_v9 = vsel %vm321_vm0, %v1131_v4, 0.0 }
 0xa76   : > { %1133 = vadd.xlane.f32.xlu0 %v1132_v9 }
 0xb03   : > { %v1134_v10 = vpop.xlane.xlu0 %1133 }
 0xb04   : > { %v1135_v11 = vmul.f32 0.03125, %v1134_v10 }
 0xb06   : > { %v1136_v12 = vsub.f32 %v1131_v4, %v1135_v11 }
 0xb08   : > { %v1137_v13 = vmul.f32 %v1136_v12, %v1136_v12 }
 0xb0a   : > { %v1138_v16 = vsel %vm321_vm0, %v1137_v13, 0.0 }
 0xb0b   : > { %1139 = vadd.xlane.f32.xlu0 %v1138_v16 }
 0xb98   : > { %v1140_v18 = vpop.xlane.xlu0 %1139 }
 0xb99   : > { %v1141_v19 = vmul.f32 0.03125, %v1140_v18 }
 0xb9b   : > { %v1142_v20 = vadd.f32 1e-05, %v1141_v19 }
 0xb9d   : > { %1485 = vrsqrt.f32 %v1142_v20 }
 0xba7   : > { %v1486_v22 = vpop.eup %1485 }
 0xba8   : > { %v1144_v23 = vmul.f32 %v1486_v22, %v1136_v12 }
 0xbaa   : > { %v1149_v25 = vmul.f32 %v1148_v21, %v1144_v23 }
 0xbac   : > { %v1154_v26 = vadd.f32 %v1153_v24, %v1149_v25 }
 0xbae   : > { %v1155_v27 = vpack.c.bf16 %v1154_v26, %v1154_v26 }
 0xbb0   : > { %1157 = vst.msk [vmem:[%s311_s22] sm:$0xf] %vm1156_vm8, %v1155_v27 }
 0xbb1   : > { %1528 = shalt.err (!%p1525_p7)
}
 0xbb2   : > { %s1529_s10 = scalar_lea.hbm %s1894_s20, 64  ;;  %s1533_s21 = scalar_lea.hbm %s1944_s8, 128 }
 0xbb3   : > { %p1530_p8 = scmp.ne.s32.totalorder %s1894_s20, %s1529_s10  ;;  %p1534_p1 = scmp.lt.u32.totalorder %s1894_s20, %s1944_s8 }
 0xbb4   : > { %p1535_p0 = scmp.lt.u32.totalorder %s1533_s21, %s1529_s10  ;;  %p1537_p6 = scmp.lt.u32.totalorder %s1529_s10, %s1894_s20 }
 0xbb5   : > { %p1531_p11 = pnand %p1530_p8, %p1955_p9 }
 0xbb6   : > { %p1536_p5 = por %p1535_p0, %p1534_p1 }
 0xbb7   : > { %p1532_p13 = pneg %p1531_p11 }
 0xbb8   : > { %p1538_p10 = por %p1537_p6, %p1536_p5 }
 0xbba   : > { %p1539_p12 = pnand %p1538_p10, %p1532_p13 }
 0xbbc   : > { %1542 = shalt.err (!%p1539_p12)
}
 0xbbd   : > { %1395 = dma.vmem_to_hbm [thread:$0]  (%p1955_p9), %s1896_s23, 64, %s1894_s20, %s1159_s26  }
 0xbbe PF: > { %p1407_p2 = scmp.ge.s32.totalorder %s1581_s30, 2  ;;  %s1184_s25 = sand.u32 1, %s1569_s27  }
 0xbbf   : > { %p1956_p3 = scmp.ne.s32.totalorder %s1949_s16, 0  ;;  %s1185_s17 = scalar_lea.sflag [#allocation4], %s1184_s25 }
 0xbc1   : > { %p1402_p4 = pnand %p1407_p2, %p1956_p3 }
 0xbc3   : > { %1564 = dma.done.wait (!%p1402_p4), %s1185_s17, 64  }
 0xbc4   : > { %1566 = vsyncadd (!%p1402_p4), %s1185_s17, 4294967232  ;;  %p19_p7 = scmp.ge.s32.totalorder %s1667_s11, 4   ;;  %s1957_s27 = smov %s1573_s28 }
 0xbc5   : > { %s1958_s28 = smov %s1577_s29  ;;  %s1959_s29 = smov %s1678_s14 }
 0xbc6   : > { %s1960_s30 = smov %s1667_s11  ;;  %21 = sbr.rel (!%p19_p7) target bundleno = 4 (0x4), region = 92 }
 0xbcd   :  { %1190 = vsyncpa [#allocation3], 1 }
 0xbce   :  { %1192 = vsyncpa [#allocation3 + $0x1], 1 }
 0xbcf   :  { %1193 = vsyncpa [#allocation4], 1 }
 0xbd0   :  { %1195 = vsyncpa [#allocation4 + $0x1], 1 }

</bundles_post_ra>
